<compile_context>
chip_gen: v6e
topology: v6e:2x2x1
jax: 0.10.0
libtpu: 0.0.40
codegen_flags: <defaults>
</compile_context>

<pallas_src>
import functools

import numpy as np
import jax
import jax.numpy as jnp
from jax.experimental import pallas as pl
from jax.experimental.pallas import tpu as pltpu


def _round_up(v, m):
    return (v + m - 1) // m * m


def _temporal_conv_kernel(x_ref, w_ref, o_ref, *, Kt, c_out, c_pad, n, T_out, act_func):
    # x_ref : (c_in, T*n)      one batch element, NCHW with (T, n) flattened
    # w_ref : (R, Kt*c_in)     R = num_parts * c_pad (conv [, gate] [, residual])
    # o_ref : (c_out, T_out*n)
    TN = T_out * n
    x = x_ref[...]                                     # native dtype, no upcast

    # im2col along the flat (T*n) axis: tap k is the contiguous lane window
    # [k*n, k*n + T_out*n).  Row order of x_col is k*c_in + c, matching w_ref.
    x_col = jnp.concatenate([x[:, k * n: k * n + TN] for k in range(Kt)], axis=0)

    # One MXU matmul: all Kt taps (+ GLU gate) (+ residual) at once, f32 acc.
    acc = jax.lax.dot_general(
        w_ref[...], x_col, (((1,), (0,)), ((), ())),
        preferred_element_type=jnp.float32)            # (R, TN) float32

    if act_func == 'glu':
        p = acc[0:c_pad]                   # conv "value" half
        q = acc[c_pad:2 * c_pad]           # conv "gate" half
        r = acc[2 * c_pad:3 * c_pad]       # residual (channel-matched input)
        out = (p + r) * jax.nn.sigmoid(q)
    elif act_func == 'relu':
        out = jnp.maximum(acc[0:c_pad] + acc[c_pad:2 * c_pad], 0.0)
    elif act_func == 'linear':
        out = acc
    elif act_func == 'sigmoid':
        out = jax.nn.sigmoid(acc)
    else:
        raise ValueError(f'ERROR: activation function "{act_func}" is not defined.')

    o_ref[...] = out[:c_out].astype(o_ref.dtype)


def temporal_conv_layer(x, params, Kt, c_out, act_func):
    """x: (B, c_in, T, n) NCHW, exactly like the PyTorch module's forward."""
    if act_func not in ('glu', 'relu', 'linear', 'sigmoid'):
        raise ValueError(f'ERROR: activation function "{act_func}" is not defined.')
    B, c_in, T, n = x.shape
    T_out = T - Kt + 1
    TN_out = T_out * n
    c_pad = _round_up(c_out, 8)            # sublane-tile aligned part size

    # Temporal conv weight: torch OIHW (O, c_in, Kt, 1) -> (O, Kt*c_in)
    # with column index = k*c_in + c (matches x_col row order in the kernel).
    wt = params['wt_glu'] if act_func == 'glu' else params['wt']
    O = wt.shape[0]
    w_conv = jnp.transpose(wt[:, :, :, 0], (0, 2, 1)).reshape(O, Kt * c_in)

    # Residual channel-matching matrix (c_out, c_in): 1x1 conv / zero-padded
    # identity / identity, folded into extra output rows that only see the
    # last tap (k = Kt-1)  ==>  residual == channel_match(x)[:, :, Kt-1:T, :].
    if c_in > c_out:
        wres = params['wt_input'][:, :, 0, 0]
    elif c_in < c_out:
        wres = jnp.concatenate(
            [jnp.eye(c_in, dtype=x.dtype),
             jnp.zeros((c_out - c_in, c_in), dtype=x.dtype)], axis=0)
    else:
        wres = jnp.eye(c_in, dtype=x.dtype)
    w_res = jnp.zeros((c_out, Kt * c_in), dtype=x.dtype)
    w_res = w_res.at[:, (Kt - 1) * c_in:].set(wres.astype(x.dtype))

    def pad_rows(w):                       # (rows <= c_pad, K) -> (c_pad, K)
        return jnp.pad(w, ((0, c_pad - w.shape[0]), (0, 0)))

    if act_func == 'glu':
        parts = [pad_rows(w_conv[:c_out]), pad_rows(w_conv[c_out:]), pad_rows(w_res)]
    elif act_func == 'relu':
        parts = [pad_rows(w_conv), pad_rows(w_res)]
    else:                                  # 'linear' / 'sigmoid'
        parts = [pad_rows(w_conv)]
    w_big = jnp.concatenate(parts, axis=0).astype(x.dtype)    # (R, Kt*c_in)
    R = w_big.shape[0]

    # NCHW consumed / produced directly: these reshapes only merge/split the
    # two trailing contiguous dims, so XLA moves no data.
    x_flat = x.reshape(B, c_in, T * n)

    kernel = functools.partial(
        _temporal_conv_kernel, Kt=Kt, c_out=c_out, c_pad=c_pad,
        n=n, T_out=T_out, act_func=act_func)

    out_flat = pl.pallas_call(
        kernel,
        out_shape=jax.ShapeDtypeStruct((B, c_out, TN_out), x.dtype),
        grid_spec=pltpu.PrefetchScalarGridSpec(
            num_scalar_prefetch=0,
            grid=(B,),
            in_specs=[
                pl.BlockSpec((None, c_in, T * n), lambda b: (b, 0, 0)),
                pl.BlockSpec((R, Kt * c_in), lambda b: (0, 0)),
            ],
            out_specs=pl.BlockSpec((None, c_out, TN_out), lambda b: (b, 0, 0)),
        ),
        compiler_params=pltpu.CompilerParams(
            dimension_semantics=("parallel",)),
    )(x_flat, w_big)

    return out_flat.reshape(B, c_out, T_out, n)


# ------------------------- reference & init helpers -------------------------

def xavier_uniform(key, shape, dtype=jnp.float32):
    # torch conv weight layout (out_c, in_c, kh, kw)
    fan_out = shape[0] * shape[2] * shape[3]
    fan_in = shape[1] * shape[2] * shape[3]
    bound = float(np.sqrt(6.0 / (fan_in + fan_out)))
    return jax.random.uniform(key, shape, dtype, minval=-bound, maxval=bound)


def reference_forward(x, params, Kt, c_in, c_out, act_func):
    """Pure-JAX transcription of the PyTorch forward (NCHW)."""
    B, _, T, n = x.shape
    if c_in > c_out:
        x_input = jnp.einsum('oc,bctn->botn', params['wt_input'][:, :, 0, 0], x)
    elif c_in < c_out:
        x_input = jnp.concatenate(
            [x, jnp.zeros((B, c_out - c_in, T, n), x.dtype)], axis=1)
    else:
        x_input = x
    x_input = x_input[:, :, Kt - 1:T, :]

    def conv(w):
        return jax.lax.conv_general_dilated(
            x, w, window_strides=(1, 1), padding='VALID',
            dimension_numbers=('NCHW', 'OIHW', 'NCHW'))

    if act_func == 'glu':
        x_conv = conv(params['wt_glu'])
        return (x_conv[:, :c_out] + x_input) * jax.nn.sigmoid(x_conv[:, -c_out:])
    x_conv = conv(params['wt'])
    if act_func == 'linear':
        return x_conv
    if act_func == 'relu':
        return jax.nn.relu(x_conv + x_input)
    if act_func == 'sigmoid':
        return jax.nn.sigmoid(x_conv)
    raise ValueError(act_func)


if __name__ == "__main__":
    B, T, n, Kt = 2, 16, 128, 3
    key = jax.random.PRNGKey(0)
    ok = True
    # Cover all three residual branches: c_in == c_out, c_in > c_out, c_in < c_out.
    for c_in, c_out in ((4, 4), (8, 4), (4, 8)):
        key, kx, k1, k2, k3 = jax.random.split(key, 5)
        x = jax.random.normal(kx, (B, c_in, T, n), jnp.float32)
        params = {
            'wt_input': xavier_uniform(k1, (c_out, c_in, 1, 1)),
            'wt_glu':   xavier_uniform(k2, (2 * c_out, c_in, Kt, 1)),
            'wt':       xavier_uniform(k3, (c_out, c_in, Kt, 1)),
        }
        for act in ('glu', 'relu', 'linear', 'sigmoid'):
            out = jax.block_until_ready(
                temporal_conv_layer(x, params, Kt, c_out, act))
            ref = reference_forward(x, params, Kt, c_in, c_out, act)
            if out.shape != ref.shape or not np.allclose(
                    np.asarray(out), np.asarray(ref), atol=1e-4, rtol=1e-4):
                ok = False

    if ok:
        print("KERNEL_OK")
</pallas_src>

<mosaic_0001>
module attributes {stable_mosaic.version = 11 : i64} {
  func.func @_temporal_conv_kernel(%arg0: i32, %arg1: memref<1x4x2048xf32, #tpu.memory_space<vmem>>, %arg2: memref<24x12xf32, #tpu.memory_space<vmem>>, %arg3: memref<1x4x1792xf32, #tpu.memory_space<vmem>>) attributes {dimension_semantics = [#tpu.dimension_semantics<parallel>], iteration_bounds = array<i64: 2>, scalar_prefetch = 0 : i64, scratch_operands = 0 : i64, tpu.core_type = #tpu.core_type<tc>, window_params = [{transform_indices = @transform_0, window_bounds = array<i64: 1, 4, 2048>}, {pipeline_mode = #tpu.pipeline_mode<synchronous>, transform_indices = @transform_1, window_bounds = array<i64: 24, 12>}, {transform_indices = @transform_2, window_bounds = array<i64: 1, 4, 1792>}]} {
    %c0 = arith.constant 0 : index
    %c0_0 = arith.constant 0 : index
    %c0_1 = arith.constant 0 : index
    %0 = vector.load %arg1[%c0, %c0_0, %c0_1] : memref<1x4x2048xf32, #tpu.memory_space<vmem>>, vector<1x4x2048xf32>
    %1 = vector.shape_cast %0 : vector<1x4x2048xf32> to vector<4x2048xf32>
    %2 = vector.extract_strided_slice %1 {offsets = [0, 0], sizes = [4, 1792], strides = [1, 1]} : vector<4x2048xf32> to vector<4x1792xf32>
    %3 = vector.extract_strided_slice %1 {offsets = [0, 128], sizes = [4, 1792], strides = [1, 1]} : vector<4x2048xf32> to vector<4x1792xf32>
    %4 = vector.extract_strided_slice %1 {offsets = [0, 256], sizes = [4, 1792], strides = [1, 1]} : vector<4x2048xf32> to vector<4x1792xf32>
    %5 = tpu.concatenate %2, %3, %4 in 0 : vector<4x1792xf32>, vector<4x1792xf32>, vector<4x1792xf32> -> vector<12x1792xf32>
    %c0_2 = arith.constant 0 : index
    %c0_3 = arith.constant 0 : index
    %6 = vector.load %arg2[%c0_2, %c0_3] : memref<24x12xf32, #tpu.memory_space<vmem>>, vector<24x12xf32>
    %cst = arith.constant dense<0.000000e+00> : vector<24x1792xf32>
    %7 = tpu.matmul %6, %5, %cst {dimension_numbers = #tpu.dot_dimension_numbers<[1], [0], [0], [1], [0, 0, 1, 1], [], []>} : vector<24x12xf32>, vector<12x1792xf32>, vector<24x1792xf32> -> vector<24x1792xf32>
    %8 = vector.extract_strided_slice %7 {offsets = [0, 0], sizes = [8, 1792], strides = [1, 1]} : vector<24x1792xf32> to vector<8x1792xf32>
    %9 = vector.extract_strided_slice %7 {offsets = [8, 0], sizes = [8, 1792], strides = [1, 1]} : vector<24x1792xf32> to vector<8x1792xf32>
    %10 = vector.extract_strided_slice %7 {offsets = [16, 0], sizes = [8, 1792], strides = [1, 1]} : vector<24x1792xf32> to vector<8x1792xf32>
    %11 = arith.addf %8, %10 : vector<8x1792xf32>
    %12 = arith.negf %9 : vector<8x1792xf32>
    %13 = math.exp %12 : vector<8x1792xf32>
    %cst_4 = arith.constant 1.000000e+00 : f32
    %14 = vector.broadcast %cst_4 : f32 to vector<8x1792xf32>
    %15 = arith.addf %14, %13 : vector<8x1792xf32>
    %16 = arith.divf %14, %15 : vector<8x1792xf32>
    %17 = arith.mulf %11, %16 : vector<8x1792xf32>
    %18 = vector.extract_strided_slice %17 {offsets = [0, 0], sizes = [4, 1792], strides = [1, 1]} : vector<8x1792xf32> to vector<4x1792xf32>
    %c0_5 = arith.constant 0 : index
    %c0_6 = arith.constant 0 : index
    %c0_7 = arith.constant 0 : index
    %19 = vector.load %arg3[%c0_5, %c0_6, %c0_7] : memref<1x4x1792xf32, #tpu.memory_space<vmem>>, vector<1x4x1792xf32>
    %20 = vector.shape_cast %19 : vector<1x4x1792xf32> to vector<4x1792xf32>
    %21 = vector.shape_cast %18 : vector<4x1792xf32> to vector<1x4x1792xf32>
    tpu.vector_store %arg3[%c0_5, %c0_6, %c0_7], %21 {strides = array<i32>} : memref<1x4x1792xf32, #tpu.memory_space<vmem>>, vector<1x4x1792xf32>,
    return
  }
  func.func @transform_0(%arg0: i32) -> (i32, i32, i32) {
    %c0_i32 = arith.constant 0 : i32
    %c0_i32_0 = arith.constant 0 : i32
    %c0_i32_1 = arith.constant 0 : i32
    return %arg0, %c0_i32, %c0_i32_0 : i32, i32, i32
  }
  func.func @transform_1(%arg0: i32) -> (i32, i32) {
    %c0_i32 = arith.constant 0 : i32
    %c0_i32_0 = arith.constant 0 : i32
    %c0_i32_1 = arith.constant 0 : i32
    return %c0_i32, %c0_i32_0 : i32, i32
  }
  func.func @transform_2(%arg0: i32) -> (i32, i32, i32) {
    %c0_i32 = arith.constant 0 : i32
    %c0_i32_0 = arith.constant 0 : i32
    %c0_i32_1 = arith.constant 0 : i32
    return %arg0, %c0_i32, %c0_i32_0 : i32, i32, i32
  }
}

</mosaic_0001>

<bundles_post_ra>
// kernel: tpu_custom_call.1
= control target key start
LH: loop header
LB: loop body
LE: loop exit
PB: predicated region body
PF: predicated region fallthrough
CT: control target
= control target key end

     0   :  { %7 = vsyncpa [#allocation3], 0  ;;  %s1704_s0 = inlined_call_operand.hbm [shape: f32[2,4,2048], index: 0, kind: input, shape index: {}]   ;;  %s1705_s1 = inlined_call_operand.vmem [shape: f32[24,12], index: 1, kind: input, shape index: {}]   ;;  %s1706_s2 = inlined_call_operand.hbm [shape: f32[2,4,1792], index: 2, kind: output, shape index: {}]  }
   0x1   :  { %9 = vsyncpa [#allocation3 + $0x1], 0 }
   0x2   :  { %10 = vsyncpa [#allocation4], 0 }
   0x3   :  { %12 = vsyncpa [#allocation4 + $0x1], 0  ;;  %s1364_s9 = smov 0   ;;  %s1366_s10 = smov 0  }
   0x4   :  { %s1368_s11 = smov 0   ;;  %s1370_s12 = smov 0  }
   0x5 LB: > { %s1385_s13 = sadd.s32 4294967295, %s1344_s12   ;;  %s1067_s14 = sadd.s32 4294967294, %s1344_s12   ;;  %s1344_s12 = sphi %s1370_s12, %s1723_s12   ;;  %s1340_s11 = sphi %s1368_s11, %s1722_s11   ;;  %s1336_s10 = sphi %s1366_s10, %s1721_s10   ;;  %s1332_s9 = sphi %s1364_s9, %s1720_s9  }
   0x6   : > { %s1389_s15 = sadd.s32 1, %s1344_s12   ;;  %s25_s16 = sadd.s32 1, %s1340_s11 }
   0x7   : > { %s22_s17 = ssub.s32 %s1344_s12, %s1389_s15  ;;  %p32_p0 = scmp.ne.s32.totalorder %s1340_s11, %s1336_s10 }
   0x8   : > { %p23_p1 = scmp.eq.s32.totalorder %s22_s17, 0  ;;  %p33_p2 = scmp.eq.s32.totalorder %s1344_s12, 0 }
   0x9   : > { %p38_p3 = scmp.ne.s32.totalorder %s1336_s10, %s1332_s9  ;;  %p39_p4 = scmp.eq.s32.totalorder %s1385_s13, 0 }
   0xa   : > { %s1401_s18 = scalar_select %p23_p1, %s1340_s11, %s25_s16  }
   0xb   : > { %p1403_p5 = por %p33_p2, %p32_p0  ;;  %p1407_p6 = por %p39_p4, %p38_p3 }
   0xc   : > { %p83_p7 = scmp.eq.s32.totalorder %s1385_s13, 1  ;;  %p89_p8 = scmp.eq.s32.totalorder %s1067_s14, 1 }
   0xd   : > { %s1710_s20 = scalar_select %p1407_p6, 1, 0 }
   0xe   : > { %p1146_p10 = scmp.lt.s32.totalorder %s1344_s12, 2  ;;  %p1414_p11 = por %p83_p7, %p32_p0 }
   0xf   : > { %p1418_p12 = por %p89_p8, %p38_p3  ;;  %s112_s23 = sand.u32 1, %s1340_s11  }
  0x10   : > { %s1711_s21 = scalar_select %p1414_p11, 1, 0 }
  0x11   : > { %s1712_s22 = scalar_select %p1418_p12, 1, 0 }
  0x12   : > { %s1127_s24 = sshll.u32 %s1344_s12, 10  ;;  %s1070_s25 = sshll.u32 %s112_s23, 6 }
  0x13   : > { %s1427_s28 = scalar_lea.hbm %s1704_s0, %s1127_s24  ;;  %s116_s29 = scalar_lea.vmem [#allocation2], %s1070_s25 }
  0x14   : > { %s124_s30 = sshll.u32 %s116_s29, 4  ;;  %p1431_p13 = pnand %p1146_p10, %p1403_p5  ;;  %s1435_s30 = int_to_ptr.vmem [resolvable:$true] %s124_s30 }
  0x15   : > { %s113_s4 = scalar_lea.sflag [#allocation3], %s112_s23  ;;  %s1252_s5 = scalar_lea.hbm %s1427_s28, 1024 }
  0x16   : > { %p1253_p2 = scmp.ne.s32.totalorder %s1427_s28, %s1252_s5  ;;  %p1254_p3 = pneg %p1431_p13 }
  0x17   : > { %s1257_s8 = scalar_lea.hbm %s1704_s0, 2048  ;;  %p1258_p5 = scmp.lt.s32.totalorder %s1427_s28, %s1704_s0 }
  0x18   : > { %p1255_p4 = pnand %p1254_p3, %p1253_p2  ;;  %p1259_p8 = scmp.lt.s32.totalorder %s1257_s8, %s1252_s5 }
  0x1a   : > { %p1256_p7 = pneg %p1255_p4  ;;  %p1260_p10 = por %p1259_p8, %p1258_p5 }
  0x1c   : > { %p1261_p9 = pnand %p1260_p10, %p1256_p7 }
  0x1e   : > { %1264 = shalt.err (!%p1261_p9)
}
  0x1f   : > { %s1265_s17 = scalar_lea.vmem %s1435_s30, 1024  ;;  %s1346_s19 = smov [#allocation2]  }
  0x20   : > { %p1266_p0 = scmp.ne.s32.totalorder %s1435_s30, %s1265_s17  ;;  %s1270_s23 = sshll.u32 %s1346_s19, 4  ;;  %s1271_s23 = int_to_ptr.vmem [resolvable:$false] %s1270_s23 }
  0x21   : > { %s1272_s24 = scalar_lea.vmem %s1271_s23, 2048  ;;  %p1273_p4 = scmp.lt.s32.totalorder %s1435_s30, %s1271_s23 }
  0x22   : > { %p1268_p1 = pnand %p1266_p0, %p1254_p3  ;;  %p1274_p12 = scmp.lt.s32.totalorder %s1272_s24, %s1265_s17 }
  0x24   : > { %p1269_p2 = pneg %p1268_p1  ;;  %p1275_p11 = por %p1274_p12, %p1273_p4 }
  0x26   : > { %p1276_p6 = pnand %p1275_p11, %p1269_p2 }
  0x28   : > { %1279 = shalt.err (!%p1276_p6)
}
  0x29   : > { %1141 = dma.hbm_to_vmem [thread:$0]  (!%p1431_p13), %s1427_s28, 1024, %s1435_s30, %s113_s4  }
  0x2a   : > { %p1714_p9 = scmp.lt.s32.totalorder %s1344_s12, 3  ;;  %p1715_p7 = scmp.ge.s32.totalorder %s1344_s12, 1 }
  0x2c   : > { %p130_p0 = pnand %p1715_p7, %p1714_p9 }
  0x2d   : > { %s1462_s25 = sand.u32 (!%p130_p0), 1, %s1336_s10   ;;  %p1716_p6 = scmp.ne.s32.totalorder (!%p130_p0), %s1710_s20, 0 }
  0x2e   : > { %133 = sbr.rel (%p130_p0) target bundleno = 340 (0x154), region = 28  ;;  %s1074_s26 = sshll.u32 (!%p130_p0), %s1462_s25, 6 }
  0x2f   : > { %s136_s27 = scalar_lea.sflag (!%p130_p0), [#allocation3], %s1462_s25  ;;  %s1466_s29 = scalar_lea.vmem (!%p130_p0), [#allocation2], %s1074_s26 }
  0x33   : > { %1323 = dma.done.wait (%p1716_p6), %s136_s27, 1024  }
  0x34   : > { %1325 = vsyncadd (%p1716_p6), %s136_s27, 4294966272  ;;  %v1347_v0 = vmov 0.0   ;;  %v161_v1 = vld [vmem:[%s1466_s29 + $0x8] sm:$0xff]  ;;  %vm205_vm0 = vcmask 1043456   ;;  %v160_v2 = vld [vmem:[%s1466_s29] sm:$0xff]  ;;  %vm216_vm1 = vcmask 97280  }
  0x35   : > { %318 = vmatprep.mubr.f32.mxu0 %v1347_v0  ;;  %324 = vmatprep.mubr.f32.mxu1 %v1347_v0  ;;  %v176_v3 = vcombine.high %v161_v1, %v161_v1  ;;  %v175_v4 = vcombine.high %v160_v2, %v160_v2  ;;  %v190_v5 = vcombine.low %v161_v1, %v161_v1  ;;  %v162_v6 = vld [vmem:[%s1466_s29 + $0x10] sm:$0xff]  ;;  %v163_v7 = vld [vmem:[%s1466_s29 + $0x18] sm:$0xff]  ;;  %v1486_v11 = vld [vmem:[%s1705_s1] sm:$0xff]  ;;  %s1132_s6 = smul.u32 56, %s1462_s25  ;;  %s983_s23 = scalar_lea.sflag [#allocation4], %s1462_s25 }
  0x36   : > { %v177_v9 = vcombine.high %v162_v6, %v162_v6  ;;  %v192_v10 = vcombine.low %v163_v7, %v163_v7  ;;  %v1491_v12 = vld [vmem:[%s1705_s1 + $0x8] sm:$0xff]  ;;  %v178_v13 = vcombine.high %v163_v7, %v163_v7  ;;  %v191_v14 = vcombine.low %v162_v6, %v162_v6  ;;  %v1508_v17 = vld [vmem:[%s1705_s1 + $0x10] sm:$0xff]  ;;  %v164_v19 = vld [vmem:[%s1466_s29 + $0x20] sm:$0xff]  ;;  %s1133_s8 = smul.u32 896, %s1385_s13  ;;  %p1717_p12 = scmp.ne.s32.totalorder %s1711_s21, 0 }
  0x37   : > { %1075 = vmatprep.subr.msk.mxu0 %vm205_vm0, %v176_v3  ;;  %1128 = vmatprep.subr.msk.mxu1 %vm205_vm0, %v176_v3  ;;  %v206_v8 = vsel %vm205_vm0, %v175_v4, %v190_v5  ;;  %v1501_v16 = vld [vmem:[%s1466_s29 + $0x28] sm:$0xff]  ;;  %v179_v21 = vcombine.high %v164_v19, %v164_v19  ;;  %v193_v22 = vcombine.low %v164_v19, %v164_v19  ;;  %v167_v26 = vld [vmem:[%s1466_s29 + $0x38] sm:$0xff]  ;;  %v166_v27 = vld [vmem:[%s1466_s29 + $0x30] sm:$0xff]  ;;  %s1639_s7 = scalar_lea.vmem [#allocation5], %s1132_s6  ;;  %s1348_s13 = smov [#allocation5]  }
  0x38   : > { %1076 = vmatpush1.msk.msra.mxu0 %vm205_vm0, %v161_v1  ;;  %1130 = vmatpush1.msk.msra.mxu1 %vm205_vm0, %v161_v1  ;;  %v208_v15 = vsel %vm205_vm0, %v177_v9, %v192_v10  ;;  %v207_v18 = vsel %vm205_vm0, %v176_v3, %v191_v14  ;;  %v180_v20 = vcombine.high %v1501_v16, %v1501_v16  ;;  %s997_s14 = sshll.u32 %s1639_s7, 4  ;;  %s995_s19 = scalar_lea.hbm %s1706_s2, %s1133_s8  ;;  %s998_s14 = int_to_ptr.vmem [resolvable:$true] %s997_s14 }
  0x39   : > { %284 = vmatprep.subr.mxu0 %v206_v8  ;;  %1129 = vmatprep.subr.mxu1 %v206_v8  ;;  %v194_v23 = vcombine.low %v1501_v16, %v1501_v16  ;;  %v209_v24 = vsel %vm205_vm0, %v178_v13, %v193_v22  ;;  %v204_v28 = vcombine.high %v167_v26, %v167_v26  ;;  %s1280_s24 = scalar_lea.vmem %s998_s14, 896  ;;  %s1284_s26 = sshll.u32 %s1348_s13, 4  ;;  %s1285_s26 = int_to_ptr.vmem [resolvable:$false] %s1284_s26 }
  0x3a   : > { %285 = vmatpush1.msra.mxu0 %v160_v2  ;;  %1131 = vmatpush1.msra.mxu1 %v160_v2  ;;  %v181_v29 = vcombine.high %v166_v27, %v166_v27  ;;  %v196_v30 = vcombine.low %v167_v26, %v167_v26  ;;  %v195_v31 = vcombine.low %v166_v27, %v166_v27  ;;  %p1281_p11 = scmp.ne.s32.totalorder %s998_s14, %s1280_s24  ;;  %s1286_s27 = scalar_lea.vmem %s1285_s26, 1792 }
  0x3b   : > { %1077 = vmatmul.mubr.msk.f32.vlgmr.msra.gmra.mxu0 %vm216_vm1, %v1486_v11  ;;  %1078 = vmatmul.mubr.msk.f32.vlgmr.msra.gmra.mxu1 %vm216_vm1, %v1491_v12  ;;  %v210_v25 = vsel %vm205_vm0, %v179_v21, %v194_v23  ;;  %p1287_p3 = scmp.lt.s32.totalorder %s998_s14, %s1285_s26  ;;  %p1288_p5 = scmp.lt.s32.totalorder %s1286_s27, %s1280_s24 }
  0x3c   : > { %1080 = vmatprep.subr.msk.mxu1 %vm205_vm0, %v177_v9  ;;  %1085 = vmatprep.subr.msk.mxu0 %vm205_vm0, %v178_v13  ;;  %v212_v32 = vsel %vm205_vm0, %v181_v29, %v196_v30  ;;  %v211_v33 = vsel %vm205_vm0, %v180_v20, %v195_v31  ;;  %p1282_p13 = pnand %p1281_p11, %p1717_p12 }
  0x3d   : > { %1081 = vmatpush1.msk.msra.mxu1 %vm205_vm0, %v162_v6  ;;  %1086 = vmatpush1.msk.msra.mxu0 %vm205_vm0, %v163_v7  ;;  %p1289_p8 = por %p1288_p5, %p1287_p3 }
  0x3e   : > { %450 = vmatprep.subr.mxu0 %v208_v15  ;;  %330 = vmatprep.mubr.f32.mxu1 %v1347_v0  ;;  %p1283_p1 = pneg %p1282_p13 }
  0x3f   : > { %451 = vmatpush1.msra.mxu0 %v162_v6  ;;  %484 = vmatprep.mubr.f32.mxu0 %v1347_v0 }
  0x40   : > { %1079 = vmatmul.mubr.msk.f32.gmra.mxu1 %vm216_vm1, %v1508_v17  ;;  %367 = vmatprep.subr.mxu1 %v207_v18  ;;  %p1290_p10 = pnand %p1289_p8, %p1283_p1 }
  0x41   : > { %1087 = vmatmul.mubr.msk.f32.vlgmr.msra.gmra.mxu0 %vm216_vm1, %v1486_v11  ;;  %368 = vmatpush1.msra.mxu1 %v161_v1 }
  0x42   : > { %401 = vmatprep.mubr.f32.mxu1 %v1347_v0  ;;  %490 = vmatprep.mubr.f32.mxu0 %v1347_v0 }
  0x43   : > { %1090 = vmatprep.subr.msk.mxu1 %vm205_vm0, %v179_v21  ;;  %1095 = vmatprep.subr.msk.mxu0 %vm205_vm0, %v180_v20 }
  0x44   : > { %1082 = vmatmul.mubr.msk.f32.vlgmr.msra.gmra.mxu1 %vm216_vm1, %v1486_v11  ;;  %1096 = vmatpush1.msk.msra.mxu0 %vm205_vm0, %v1501_v16 }
  0x45   : > { %1088 = vmatmul.mubr.msk.f32.gmra.mxu0 %vm216_vm1, %v1491_v12  ;;  %1091 = vmatpush1.msk.msra.mxu1 %vm205_vm0, %v164_v19 }
  0x46   : > { %407 = vmatprep.mubr.f32.mxu1 %v1347_v0  ;;  %496 = vmatprep.mubr.f32.mxu0 %v1347_v0 }
  0x47   : > { %533 = vmatprep.subr.mxu1 %v209_v24  ;;  %616 = vmatprep.subr.mxu0 %v210_v25 }
  0x48   : > { %1083 = vmatmul.mubr.msk.f32.gmra.mxu1 %vm216_vm1, %v1491_v12  ;;  %617 = vmatpush1.msra.mxu0 %v164_v19 }
  0x49   : > { %1089 = vmatmul.mubr.msk.f32.gmra.mxu0 %vm216_vm1, %v1508_v17  ;;  %413 = vmatprep.mubr.f32.mxu1 %v1347_v0 }
  0x4a   : > { %534 = vmatpush1.msra.mxu1 %v163_v7  ;;  %650 = vmatprep.mubr.f32.mxu0 %v1347_v0 }
  0x4b   : > { %1100 = vmatprep.subr.msk.mxu1 %vm205_vm0, %v181_v29  ;;  %1105 = vmatprep.subr.msk.mxu0 %vm205_vm0, %v204_v28 }
  0x4c   : > { %1084 = vmatmul.mubr.msk.f32.gmra.mxu1 %vm216_vm1, %v1508_v17 }
  0x4d   : > { %1097 = vmatmul.mubr.msk.f32.vlgmr.msra.gmra.mxu0 %vm216_vm1, %v1486_v11  ;;  %567 = vmatprep.mubr.f32.mxu1 %v1347_v0 }
  0x4e   : > { %656 = vmatprep.mubr.f32.mxu0 %v1347_v0  ;;  %1106 = vmatpush1.msk.msra.mxu0 %vm205_vm0, %v167_v26 }
  0x4f   : > { %782 = vmatprep.subr.mxu0 %v212_v32 }
  0x50   : > { %1092 = vmatmul.mubr.msk.f32.vlgmr.msra.gmra.mxu1 %vm216_vm1, %v1486_v11  ;;  %783 = vmatpush1.msra.mxu0 %v166_v27 }
  0x51   : > { %1098 = vmatmul.mubr.msk.f32.gmra.mxu0 %vm216_vm1, %v1491_v12  ;;  %1101 = vmatpush1.msk.msra.mxu1 %vm205_vm0, %v166_v27 }
  0x52   : > { %573 = vmatprep.mubr.f32.mxu1 %v1347_v0  ;;  %662 = vmatprep.mubr.f32.mxu0 %v1347_v0 }
  0x53   : > { %699 = vmatprep.subr.mxu1 %v211_v33 }
  0x54   : > { %1093 = vmatmul.mubr.msk.f32.gmra.mxu1 %vm216_vm1, %v1491_v12 }
  0x55   : > { %1099 = vmatmul.mubr.msk.f32.gmra.mxu0 %vm216_vm1, %v1508_v17  ;;  %579 = vmatprep.mubr.f32.mxu1 %v1347_v0 }
  0x56   : > { %700 = vmatpush1.msra.mxu1 %v1501_v16  ;;  %816 = vmatprep.mubr.f32.mxu0 %v1347_v0 }
  0x58   : > { %1094 = vmatmul.mubr.msk.f32.gmra.mxu1 %vm216_vm1, %v1508_v17 }
  0x59   : > { %1107 = vmatmul.mubr.msk.f32.vlgmr.msra.gmra.mxu0 %vm216_vm1, %v1486_v11  ;;  %733 = vmatprep.mubr.f32.mxu1 %v1347_v0 }
  0x5a   : > { %822 = vmatprep.mubr.f32.mxu0 %v1347_v0 }
  0x5c   : > { %1102 = vmatmul.mubr.msk.f32.vlgmr.msra.gmra.mxu1 %vm216_vm1, %v1486_v11 }
  0x5d   : > { %1108 = vmatmul.mubr.msk.f32.gmra.mxu0 %vm216_vm1, %v1491_v12  ;;  %739 = vmatprep.mubr.f32.mxu1 %v1347_v0 }
  0x5e   : > { %828 = vmatprep.mubr.f32.mxu0 %v1347_v0 }
  0x60   : > { %1103 = vmatmul.mubr.msk.f32.gmra.mxu1 %vm216_vm1, %v1491_v12 }
  0x61   : > { %1109 = vmatmul.mubr.msk.f32.gmra.mxu0 %vm216_vm1, %v1508_v17  ;;  %745 = vmatprep.mubr.f32.mxu1 %v1347_v0 }
  0x64   : > { %1104 = vmatmul.mubr.msk.f32.gmra.mxu1 %vm216_vm1, %v1508_v17 }
  0xfb   : > { %v1589_v34 = vpop.f32.mrf.mxu0  ;;  %v326_v35 = vpop.f32.mrf.mxu1 }
  0xfc   : > { %v1110_v36 = vmul.f32 -1.442695, %v326_v35 }
  0xfd   : > { %v1591_v37 = vpop.f32.mrf.mxu0  ;;  %v328_v38 = vpop.f32.mrf.mxu1 }
  0xfe   : > { %1196 = vpow2.f32 %v1110_v36  ;;  %v1111_v39 = vmul.f32 -1.442695, %v328_v38 }
 0x100   : > { %1198 = vpow2.f32 %v1111_v39  ;;  %v1593_v40 = vpop.f32.mrf.mxu1 }
 0x101   : > { %v1595_v41 = vpop.f32.mrf.mxu0  ;;  %v835_v25 = vadd.f32 %v1593_v40, %v1589_v34 }
 0x102   : > { %v334_v42 = vpop.f32.mrf.mxu1 }
 0x103   : > { %v1597_v43 = vpop.f32.mrf.mxu0  ;;  %v836_v26 = vadd.f32 %v334_v42, %v1591_v37 }
 0x104   : > { %v1599_v44 = vpop.f32.mrf.mxu1 }
 0x105   : > { %v492_v45 = vpop.f32.mrf.mxu0 }
 0x106   : > { %v1114_v46 = vmul.f32 -1.442695, %v492_v45  ;;  %v1601_v47 = vpop.f32.mrf.mxu1 }
 0x107   : > { %v494_v48 = vpop.f32.mrf.mxu0 }
 0x108   : > { %1200 = vpow2.f32 %v1114_v46  ;;  %v1115_v49 = vmul.f32 -1.442695, %v494_v48  ;;  %v409_v50 = vpop.f32.mrf.mxu1 }
 0x109   : > { %v1112_v51 = vmul.f32 -1.442695, %v409_v50  ;;  %v1603_v52 = vpop.f32.mrf.mxu0 }
 0x10a   : > { %1202 = vpow2.f32 %v1115_v49  ;;  %v411_v53 = vpop.f32.mrf.mxu1 }
 0x10b   : > { %v1197_v54 = vpop.eup %1196  ;;  %1204 = vpow2.f32 %v1112_v51  ;;  %v1113_v55 = vmul.f32 -1.442695, %v411_v53  ;;  %v1605_v56 = vpop.f32.mrf.mxu0 }
 0x10c   : > { %v891_v57 = vadd.f32 1.0, %v1197_v54  ;;  %v1607_v58 = vpop.f32.mrf.mxu1  ;;  %v839_v54 = vadd.f32 %v1603_v52, %v1595_v41 }
 0x10d   : > { %v1199_v59 = vpop.eup %1198  ;;  %1206 = vpow2.f32 %v1113_v55  ;;  %v1609_v60 = vpop.f32.mrf.mxu0  ;;  %v840_v55 = vadd.f32 %v1605_v56, %v1597_v43 }
 0x10e   : > { %1208 = vrcp.f32 %v891_v57  ;;  %v892_v61 = vadd.f32 1.0, %v1199_v59  ;;  %v1611_v62 = vpop.f32.mrf.mxu1 }
 0x10f   : > { %v1613_v63 = vpop.f32.mrf.mxu0 }
 0x110   : > { %1210 = vrcp.f32 %v892_v61  ;;  %v1615_v0 = vpop.f32.mrf.mxu1 }
 0x111   : > { %v658_v1 = vpop.f32.mrf.mxu0 }
 0x112   : > { %v1118_v2 = vmul.f32 -1.442695, %v658_v1  ;;  %v1617_v3 = vpop.f32.mrf.mxu1 }
 0x113   : > { %v660_v4 = vpop.f32.mrf.mxu0 }
 0x114   : > { %1212 = vpow2.f32 %v1118_v2  ;;  %v1119_v5 = vmul.f32 -1.442695, %v660_v4  ;;  %v575_v6 = vpop.f32.mrf.mxu1  ;;  %v837_v4 = vadd.f32 %v1607_v58, %v1599_v44 }
 0x115   : > { %v1201_v7 = vpop.eup %1200  ;;  %v1116_v8 = vmul.f32 -1.442695, %v575_v6  ;;  %v1619_v9 = vpop.f32.mrf.mxu0 }
 0x116   : > { %v895_v10 = vadd.f32 1.0, %v1201_v7  ;;  %1214 = vpow2.f32 %v1119_v5  ;;  %v577_v11 = vpop.f32.mrf.mxu1  ;;  %v838_v5 = vadd.f32 %v1611_v62, %v1601_v47  ;;  %v843_v47 = vadd.f32 %v1619_v9, %v1609_v60 }
 0x117   : > { %v1203_v12 = vpop.eup %1202  ;;  %1216 = vpow2.f32 %v1116_v8  ;;  %v1117_v13 = vmul.f32 -1.442695, %v577_v11  ;;  %v1621_v14 = vpop.f32.mrf.mxu0 }
 0x118   : > { %v1205_v15 = vpop.eup %1204  ;;  %1218 = vrcp.f32 %v895_v10  ;;  %v896_v16 = vadd.f32 1.0, %v1203_v12  ;;  %v1623_v17 = vpop.f32.mrf.mxu1  ;;  %v844_v58 = vadd.f32 %v1621_v14, %v1613_v63 }
 0x119   : > { %v893_v18 = vadd.f32 1.0, %v1205_v15  ;;  %1220 = vpow2.f32 %v1117_v13  ;;  %v1625_v19 = vpop.f32.mrf.mxu0 }
 0x11a   : > { %v1207_v20 = vpop.eup %1206  ;;  %1222 = vrcp.f32 %v896_v16  ;;  %v1627_v21 = vpop.f32.mrf.mxu1 }
 0x11b   : > { %v1209_v22 = vpop.eup %1208  ;;  %1224 = vrcp.f32 %v893_v18  ;;  %v894_v23 = vadd.f32 1.0, %v1207_v20  ;;  %v1630_v24 = vpop.f32.mrf.mxu0 }
 0x11c   : > { %v1635_v27 = vpop.f32.mrf.mxu1  ;;  %v933_v30 = vmul.f32 %v1209_v22, %v835_v25  ;;  %v842_v25 = vadd.f32 %v1627_v21, %v1617_v3 }
 0x11d   : > { %v1211_v28 = vpop.eup %1210  ;;  %1226 = vrcp.f32 %v894_v23  ;;  %v824_v29 = vpop.f32.mrf.mxu0  ;;  %v841_v23 = vadd.f32 %v1623_v17, %v1615_v0 }
 0x11e   : > { %v934_v31 = vmul.f32 %v1211_v28, %v836_v26  ;;  %v1122_v32 = vmul.f32 -1.442695, %v824_v29  ;;  %v1637_v33 = vpop.f32.mrf.mxu1 }
 0x11f   : > { %v826_v35 = vpop.f32.mrf.mxu0 }
 0x120   : > { %v961_v36 = vcombine.low %v933_v30, %v934_v31  ;;  %1228 = vpow2.f32 %v1122_v32  ;;  %v1123_v38 = vmul.f32 -1.442695, %v826_v35  ;;  %v741_v39 = vpop.f32.mrf.mxu1 }
 0x121   : > { %v1213_v45 = vpop.eup %1212  ;;  %v1120_v46 = vmul.f32 -1.442695, %v741_v39  ;;  %v830_v14 = vpop.f32.mrf.mxu0 }
 0x122   : > { %975 = vst [vmem:[%s1639_s7] sm:$0xff] %v961_v36  ;;  %v899_v34 = vadd.f32 1.0, %v1213_v45  ;;  %1230 = vpow2.f32 %v1123_v38  ;;  %v743_v37 = vpop.f32.mrf.mxu1  ;;  %v847_v0 = vadd.f32 %v830_v14, %v1625_v19 }
 0x123   : > { %v1215_v40 = vpop.eup %1214  ;;  %1232 = vpow2.f32 %v1120_v46  ;;  %v1121_v42 = vmul.f32 -1.442695, %v743_v37  ;;  %v832_v30 = vpop.f32.mrf.mxu0 }
 0x124   : > { %v1217_v48 = vpop.eup %1216  ;;  %1234 = vrcp.f32 %v899_v34  ;;  %v900_v49 = vadd.f32 1.0, %v1215_v40  ;;  %v747_v29 = vpop.f32.mrf.mxu1  ;;  %v848_v17 = vadd.f32 %v832_v30, %v1630_v24 }
 0x125   : > { %v1219_v50 = vpop.eup %1218  ;;  %v897_v51 = vadd.f32 1.0, %v1217_v48  ;;  %1236 = vpow2.f32 %v1121_v42  ;;  %v845_v38 = vadd.f32 %v747_v29, %v1635_v27 }
 0x126   : > { %v1221_v53 = vpop.eup %1220  ;;  %1238 = vrcp.f32 %v900_v49  ;;  %v937_v1 = vmul.f32 %v1219_v50, %v839_v54  ;;  %v749_v3 = vpop.f32.mrf.mxu1 }
 0x127   : > { %v1223_v57 = vpop.eup %1222  ;;  %1240 = vrcp.f32 %v897_v51  ;;  %v898_v59 = vadd.f32 1.0, %v1221_v53  ;;  %v846_v39 = vadd.f32 %v749_v3, %v1637_v33 }
 0x128   : > { %v1225_v61 = vpop.eup %1224  ;;  %v938_v2 = vmul.f32 %v1223_v57, %v840_v55 }
 0x129   : > { %1242 = vrcp.f32 %v898_v59  ;;  %v935_v6 = vmul.f32 %v1225_v61, %v837_v4 }
 0x12a   : > { %v1227_v41 = vpop.eup %1226  ;;  %v963_v52 = vcombine.low %v937_v1, %v938_v2 }
 0x12b   : > { %v936_v7 = vmul.f32 %v1227_v41, %v838_v5 }
 0x12c   : > { %977 = vst [vmem:[%s1639_s7 + $0x10] sm:$0xff] %v963_v52 }
 0x12d   : > { %v1229_v43 = vpop.eup %1228  ;;  %v962_v56 = vcombine.low %v935_v6, %v936_v7 }
 0x12e   : > { %v903_v8 = vadd.f32 1.0, %v1229_v43 }
 0x12f   : > { %v1231_v10 = vpop.eup %1230  ;;  %976 = vst [vmem:[%s1639_s7 + $0x8] sm:$0xff] %v962_v56 }
 0x130   : > { %v1233_v11 = vpop.eup %1232  ;;  %1244 = vrcp.f32 %v903_v8  ;;  %v904_v12 = vadd.f32 1.0, %v1231_v10 }
 0x131   : > { %v1235_v13 = vpop.eup %1234  ;;  %v901_v15 = vadd.f32 1.0, %v1233_v11 }
 0x132   : > { %v1237_v44 = vpop.eup %1236  ;;  %1246 = vrcp.f32 %v904_v12  ;;  %v941_v20 = vmul.f32 %v1235_v13, %v843_v47 }
 0x133   : > { %v1239_v62 = vpop.eup %1238  ;;  %1248 = vrcp.f32 %v901_v15  ;;  %v902_v16 = vadd.f32 1.0, %v1237_v44 }
 0x134   : > { %v1241_v18 = vpop.eup %1240  ;;  %v942_v22 = vmul.f32 %v1239_v62, %v844_v58 }
 0x135   : > { %1250 = vrcp.f32 %v902_v16  ;;  %v939_v26 = vmul.f32 %v1241_v18, %v841_v23 }
 0x136   : > { %v1243_v60 = vpop.eup %1242  ;;  %v965_v9 = vcombine.low %v941_v20, %v942_v22 }
 0x137   : > { %v940_v63 = vmul.f32 %v1243_v60, %v842_v25 }
 0x138   : > { %979 = vst [vmem:[%s1639_s7 + $0x20] sm:$0xff] %v965_v9 }
 0x139   : > { %v964_v28 = vcombine.low %v939_v26, %v940_v63 }
 0x13b   : > { %978 = vst [vmem:[%s1639_s7 + $0x18] sm:$0xff] %v964_v28 }
 0x13d   : > { %v1245_v31 = vpop.eup %1244 }
 0x13e   : > { %v945_v35 = vmul.f32 %v1245_v31, %v847_v0 }
 0x13f   : > { %v1247_v21 = vpop.eup %1246 }
 0x140   : > { %v1249_v32 = vpop.eup %1248  ;;  %v946_v36 = vmul.f32 %v1247_v21, %v848_v17 }
 0x141   : > { %v943_v34 = vmul.f32 %v1249_v32, %v845_v38 }
 0x142   : > { %v1251_v45 = vpop.eup %1250  ;;  %v967_v46 = vcombine.low %v945_v35, %v946_v36 }
 0x143   : > { %v944_v19 = vmul.f32 %v1251_v45, %v846_v39 }
 0x144   : > { %981 = vst [vmem:[%s1639_s7 + $0x30] sm:$0xff] %v967_v46 }
 0x145   : > { %v966_v24 = vcombine.low %v943_v34, %v944_v19 }
 0x147   : > { %980 = vst [vmem:[%s1639_s7 + $0x28] sm:$0xff] %v966_v24 }
 0x148   : > { %1293 = shalt.err (!%p1290_p10)
}
 0x149   : > { %s1294_s29 = scalar_lea.hbm %s995_s19, 896  ;;  %s1298_s28 = scalar_lea.hbm %s1706_s2, 1792 }
 0x14a   : > { %p1295_p2 = scmp.ne.s32.totalorder %s995_s19, %s1294_s29  ;;  %p1299_p7 = scmp.lt.s32.totalorder %s995_s19, %s1706_s2 }
 0x14b   : > { %p1300_p0 = scmp.lt.s32.totalorder %s1298_s28, %s1294_s29 }
 0x14c   : > { %p1296_p4 = pnand %p1295_p2, %p1717_p12 }
 0x14d   : > { %p1301_p6 = por %p1300_p0, %p1299_p7 }
 0x14e   : > { %p1297_p9 = pneg %p1296_p4 }
 0x150   : > { %p1302_p11 = pnand %p1301_p6, %p1297_p9 }
 0x152   : > { %1305 = shalt.err (!%p1302_p11)
}
 0x153   : > { %1136 = dma.vmem_to_hbm [thread:$0]  (%p1717_p12), %s998_s14, 896, %s995_s19, %s983_s23  }
 0x154 PF: > { %s1009_s4 = sand.u32 1, %s1332_s9   ;;  %p1718_p13 = scmp.ne.s32.totalorder %s1712_s22, 0 }
 0x155   : > { %p1719_p1 = scmp.ge.s32.totalorder %s1344_s12, 2  ;;  %s1010_s5 = scalar_lea.sflag [#allocation4], %s1009_s4 }
 0x157   : > { %p1143_p3 = pnand %p1719_p1, %p1718_p13 }
 0x159   : > { %p1144_p5 = pneg %p1143_p3 }
 0x15b   : > { %1327 = dma.done.wait (%p1144_p5), %s1010_s5, 896  }
 0x15c   : > { %1329 = vsyncadd (%p1144_p5), %s1010_s5, 4294966400  ;;  %p15_p8 = scmp.ge.s32.totalorder %s1389_s15, 4   ;;  %s1720_s9 = smov %s1336_s10 }
 0x15d   : > { %s1721_s10 = smov %s1340_s11  ;;  %s1722_s11 = smov %s1401_s18 }
 0x15e   : > { %s1723_s12 = smov %s1389_s15  ;;  %17 = sbr.rel (!%p15_p8) target bundleno = 5 (0x5), region = 73 }
 0x163   :  { %1015 = vsyncpa [#allocation3], 1 }
 0x164   :  { %1017 = vsyncpa [#allocation3 + $0x1], 1 }
 0x165   :  { %1018 = vsyncpa [#allocation4], 1 }
 0x166   :  { %1020 = vsyncpa [#allocation4 + $0x1], 1 }

</bundles_post_ra>
